<compile_context>
chip_gen: v7x
topology: tpu7x:2x2x1
jax: 0.10.0
libtpu: 0.0.40
codegen_flags: <defaults>
</compile_context>

<pallas_src>
import jax
import jax.numpy as jnp
from jax.experimental import pallas as pl
from jax.experimental.pallas import tpu as pltpu

OUT_FEATURES = 195
_NEG = -1e30  # finite "minus infinity" for the masked max


def _round_up(x, m):
    return (x + m - 1) // m * m


# ----------------------------------------------------------------------------
# Fused Pallas kernel: im2col-matmul conv + masked max pool + bias/ReLU + decoder
# ----------------------------------------------------------------------------
def make_textcnn_kernel(k_max, block_B, L, C_pad):
    BL = block_B * L

    def kernel(x_ref, w_ref, aux_ref, dw_ref, db_ref, o_ref):
        # ---- im2col via sublane roll (XLU) + lane concat: ONE conv matmul ----
        x = x_ref[...].astype(jnp.float32)                      # (BL, E)
        pieces = [x]
        for j in range(1, k_max):
            # row r of this copy holds x[(r + j) % BL]; wrapped / cross-batch
            # rows only land in time positions the validity mask removes, and
            # taps j >= k_i hit zero weight rows for branch i.
            pieces.append(pltpu.roll(x, BL - j, axis=0))
        x_big = jnp.concatenate(pieces, axis=1).astype(jnp.bfloat16)  # (BL, k_max*E)

        # Single MXU push for all branches and taps.
        conv = jnp.dot(x_big, w_ref[...],
                       preferred_element_type=jnp.float32)       # (BL, C_pad) f32
        conv = conv.reshape(block_B, L, C_pad)

        # ---- masked global max pool over time, then hoisted bias + ReLU ----
        aux = aux_ref[...]                                       # (2, C_pad) f32
        bias = aux[0:1, :]                                        # (1, C_pad)
        k_lane = aux[1:2, :].reshape(1, 1, C_pad)                 # kernel size per lane
        t = jax.lax.broadcasted_iota(jnp.int32, (block_B, L, C_pad), 1)
        valid = t.astype(jnp.float32) < (jnp.float32(L + 1) - k_lane)  # t <= L - k
        pooled = jnp.max(jnp.where(valid, conv, _NEG), axis=1)    # (block_B, C_pad)
        pooled = jnp.maximum(pooled + bias, 0.0)                  # ReLU monotone -> hoisted

        # ---- decoder (concat folded away: padded channel lanes are zero) ----
        out = jnp.dot(pooled.astype(jnp.bfloat16), dw_ref[...],
                      preferred_element_type=jnp.float32)         # (block_B, out_pad)
        o_ref[...] = out + db_ref[...]

    return kernel


# ----------------------------------------------------------------------------
# Forward pass
# ----------------------------------------------------------------------------
def textcnn_forward(params, sentence, *, block_B=None):
    B, L = sentence.shape
    E = params["embedding"].shape[1]
    k_max = params["k_max"]
    C_pad = params["w_big"].shape[1]
    out_pad = params["dec_b_pad"].shape[1]

    # Embedding lookup (gather) kept in plain JAX.
    # TODO(synk): fold the gather into the kernel (scalar-prefetched sentence +
    # row-gather DMA) once batch sizes make the extra HBM round trip matter.
    x_flat = params["embedding"][sentence.astype(jnp.int32)].reshape(B * L, E)

    if block_B is None:
        # Largest multiple-of-8 batch tile dividing B, capped so the
        # double-buffered (block_B*L, E) x tile stays well inside v7x's 64 MiB
        # VMEM; fall back to a single block for tiny / ragged B.
        block_B = B
        for cand in (256, 128, 64, 32, 16, 8):
            if B % cand == 0:
                block_B = cand
                break
    grid = (B // block_B,)

    kernel = make_textcnn_kernel(k_max, block_B, L, C_pad)

    out_padded = pl.pallas_call(
        kernel,
        out_shape=jax.ShapeDtypeStruct((B, out_pad), jnp.float32),
        grid=grid,
        in_specs=[
            pl.BlockSpec((block_B * L, E), lambda b: (b, 0)),    # batch tile of x
            pl.BlockSpec((k_max * E, C_pad), lambda b: (0, 0)),  # packed conv weights
            pl.BlockSpec((2, C_pad), lambda b: (0, 0)),          # [bias; ksize] per lane
            pl.BlockSpec((C_pad, out_pad), lambda b: (0, 0)),    # decoder weights
            pl.BlockSpec((1, out_pad), lambda b: (0, 0)),        # decoder bias
        ],
        out_specs=pl.BlockSpec((block_B, out_pad), lambda b: (b, 0)),
        compiler_params=pltpu.CompilerParams(
            dimension_semantics=("parallel",)),
    )(x_flat, params["w_big"], params["aux"], params["dec_w_pad"],
      params["dec_b_pad"])

    # nn.Dropout(0.5): identity at inference time (eval mode).
    # TODO(synk): training-mode dropout would need in-kernel PRNG on `pooled`.
    return out_padded[:, :OUT_FEATURES]


# ----------------------------------------------------------------------------
# Params (all packing / padding / bf16 casts precomputed at init)
# ----------------------------------------------------------------------------
def init_params(key, vocab_size, embedding_dim, kernel_sizes, num_channels):
    E = embedding_dim
    k_max = max(kernel_sizes)
    c_total = sum(num_channels)
    C_pad = _round_up(c_total, 128)                 # lane-dense conv channels
    out_pad = _round_up(OUT_FEATURES, 128)          # 256: lane-dense output

    keys = jax.random.split(key, 2 + 2 * len(kernel_sizes))

    # Embedding table in bf16 (MXU-native, half the HBM->VMEM bytes).
    embedding = (jax.random.normal(keys[0], (vocab_size, E), jnp.float32) * 0.1
                 ).astype(jnp.bfloat16)

    # Decoder (valid region [:c_total, :195]; zero padding elsewhere).
    dec_w = jax.random.normal(keys[1], (c_total, OUT_FEATURES), jnp.float32) * 0.1
    dec_b = jnp.zeros((OUT_FEATURES,), jnp.float32)
    dec_w_pad = (jnp.zeros((C_pad, out_pad), jnp.float32)
                 .at[:c_total, :OUT_FEATURES].set(dec_w)).astype(jnp.bfloat16)
    dec_b_pad = jnp.zeros((1, out_pad), jnp.float32).at[0, :OUT_FEATURES].set(dec_b)

    # Conv branches -> one packed (k_max*E, C_pad) weight slab (tap-major rows,
    # branch-channel lanes) + one (2, C_pad) aux slab [bias; kernel size].
    w_big = jnp.zeros((k_max * E, C_pad), jnp.float32)
    bias_row = jnp.zeros((C_pad,), jnp.float32)
    k_row = jnp.full((C_pad,), 1e9, jnp.float32)    # pad lanes: never valid
    ref_convs = []
    off = 0
    for i, (c, k) in enumerate(zip(num_channels, kernel_sizes)):
        # PyTorch Conv1d weight layout (C_out, E, k).
        w = (jax.random.normal(keys[2 + 2 * i], (c, E, k), jnp.float32) * 0.1
             ).astype(jnp.bfloat16)
        b = jax.random.normal(keys[3 + 2 * i], (c,), jnp.float32) * 0.1
        for j in range(k):
            w_big = w_big.at[j * E:(j + 1) * E, off:off + c].set(
                w[:, :, j].astype(jnp.float32).T)            # (E, c) for tap j
        bias_row = bias_row.at[off:off + c].set(b)
        k_row = k_row.at[off:off + c].set(float(k))
        ref_convs.append((w, b))
        off += c

    return {
        "embedding": embedding,
        "w_big": w_big.astype(jnp.bfloat16),         # (k_max*E, C_pad)
        "aux": jnp.stack([bias_row, k_row], axis=0),  # (2, C_pad) f32
        "dec_w_pad": dec_w_pad,                       # (C_pad, out_pad) bf16
        "dec_b_pad": dec_b_pad,                       # (1, out_pad) f32
        "k_max": k_max,
        "kernel_sizes": tuple(kernel_sizes),
        "num_channels": tuple(num_channels),
        "ref": {"convs": ref_convs,
                "dec_w": dec_w.astype(jnp.bfloat16),
                "dec_b": dec_b},
    }


# ----------------------------------------------------------------------------
# Pure-JAX reference (inference mode: dropout = identity), f32 math on the
# same bf16-quantized weights/embeddings the kernel consumes.
# ----------------------------------------------------------------------------
def textcnn_reference(params, sentence):
    B, L = sentence.shape
    emb = params["embedding"].astype(jnp.float32)[sentence]        # (B, L, E)
    feats = []
    for (w, b), k in zip(params["ref"]["convs"], params["kernel_sizes"]):
        w = w.astype(jnp.float32)                                   # (c, E, k)
        T = L - k + 1
        conv = sum(jnp.einsum("bte,ce->btc", emb[:, j:j + T, :], w[:, :, j])
                   for j in range(k)) + b[None, None, :]
        feats.append(jnp.max(jax.nn.relu(conv), axis=1))            # (B, c)
    enc = jnp.concatenate(feats, axis=1)                            # (B, sum c)
    return enc @ params["ref"]["dec_w"].astype(jnp.float32) + params["ref"]["dec_b"]


if __name__ == "__main__":
    # Small deterministic config.
    vocab_size = 50
    embedding_dim = 32
    kernel_sizes = (3, 4, 5)
    num_channels = (16, 16, 16)
    B, L = 2, 16

    key = jax.random.PRNGKey(0)
    pkey, dkey = jax.random.split(key)
    params = init_params(pkey, vocab_size, embedding_dim, kernel_sizes,
                         num_channels)
    sentence = jax.random.randint(dkey, (B, L), 0, vocab_size, dtype=jnp.int32)

    out = textcnn_forward(params, sentence)
    out = jax.block_until_ready(out)
    assert out.shape == (B, OUT_FEATURES), out.shape
    assert out.dtype == jnp.float32

    ref = textcnn_reference(params, sentence)
    max_err = float(jnp.max(jnp.abs(out - ref)))
    assert max_err < 2e-2, f"mismatch vs reference: max_err={max_err}"

    print("KERNEL_OK")
</pallas_src>

<mosaic_0001>
module attributes {stable_mosaic.version = 11 : i64} {
  func.func @kernel(%arg0: i32, %arg1: memref<32x32xbf16, #tpu.memory_space<vmem>>, %arg2: memref<160x128xbf16, #tpu.memory_space<vmem>>, %arg3: memref<2x128xf32, #tpu.memory_space<vmem>>, %arg4: memref<128x256xbf16, #tpu.memory_space<vmem>>, %arg5: memref<1x256xf32, #tpu.memory_space<vmem>>, %arg6: memref<2x256xf32, #tpu.memory_space<vmem>>) attributes {dimension_semantics = [#tpu.dimension_semantics<parallel>], iteration_bounds = array<i64: 1>, scalar_prefetch = 0 : i64, scratch_operands = 0 : i64, tpu.core_type = #tpu.core_type<tc>, window_params = [{transform_indices = @transform_0, window_bounds = array<i64: 32, 32>}, {pipeline_mode = #tpu.pipeline_mode<synchronous>, transform_indices = @transform_1, window_bounds = array<i64: 160, 128>}, {pipeline_mode = #tpu.pipeline_mode<synchronous>, transform_indices = @transform_2, window_bounds = array<i64: 2, 128>}, {pipeline_mode = #tpu.pipeline_mode<synchronous>, transform_indices = @transform_3, window_bounds = array<i64: 128, 256>}, {pipeline_mode = #tpu.pipeline_mode<synchronous>, transform_indices = @transform_4, window_bounds = array<i64: 1, 256>}, {transform_indices = @transform_5, window_bounds = array<i64: 2, 256>}]} {
    %c0 = arith.constant 0 : index
    %c0_0 = arith.constant 0 : index
    %0 = vector.load %arg1[%c0, %c0_0] : memref<32x32xbf16, #tpu.memory_space<vmem>>, vector<32x32xbf16>
    %1 = arith.extf %0 : vector<32x32xbf16> to vector<32x32xf32>
    %c31_i32 = arith.constant 31 : i32
    %2 = tpu.dynamic_rotate %1 by %c31_i32 dim 0 : vector<32x32xf32>, i32 -> vector<32x32xf32>
    %c30_i32 = arith.constant 30 : i32
    %3 = tpu.dynamic_rotate %1 by %c30_i32 dim 0 : vector<32x32xf32>, i32 -> vector<32x32xf32>
    %c29_i32 = arith.constant 29 : i32
    %4 = tpu.dynamic_rotate %1 by %c29_i32 dim 0 : vector<32x32xf32>, i32 -> vector<32x32xf32>
    %c28_i32 = arith.constant 28 : i32
    %5 = tpu.dynamic_rotate %1 by %c28_i32 dim 0 : vector<32x32xf32>, i32 -> vector<32x32xf32>
    %6 = tpu.concatenate %1, %2, %3, %4, %5 in 1 : vector<32x32xf32>, vector<32x32xf32>, vector<32x32xf32>, vector<32x32xf32>, vector<32x32xf32> -> vector<32x160xf32>
    %7 = arith.truncf %6 : vector<32x160xf32> to vector<32x160xbf16>
    %c0_1 = arith.constant 0 : index
    %c0_2 = arith.constant 0 : index
    %8 = vector.load %arg2[%c0_1, %c0_2] : memref<160x128xbf16, #tpu.memory_space<vmem>>, vector<160x128xbf16>
    %cst = arith.constant dense<0.000000e+00> : vector<32x128xf32>
    %9 = tpu.matmul %7, %8, %cst {dimension_numbers = #tpu.dot_dimension_numbers<[1], [0], [0], [1], [0, 0, 1, 1], [], []>} : vector<32x160xbf16>, vector<160x128xbf16>, vector<32x128xf32> -> vector<32x128xf32>
    %10 = vector.shape_cast %9 : vector<32x128xf32> to vector<2x16x128xf32>
    %c0_3 = arith.constant 0 : index
    %c0_4 = arith.constant 0 : index
    %11 = vector.load %arg3[%c0_3, %c0_4] : memref<2x128xf32, #tpu.memory_space<vmem>>, vector<2x128xf32>
    %12 = vector.extract_strided_slice %11 {offsets = [0, 0], sizes = [1, 128], strides = [1, 1]} : vector<2x128xf32> to vector<1x128xf32>
    %13 = vector.extract_strided_slice %11 {offsets = [1, 0], sizes = [1, 128], strides = [1, 1]} : vector<2x128xf32> to vector<1x128xf32>
    %14 = vector.shape_cast %13 : vector<1x128xf32> to vector<1x1x128xf32>
    %15 = tpu.iota {dimensions = array<i32: 1>} : vector<2x16x128xi32>
    %16 = arith.sitofp %15 : vector<2x16x128xi32> to vector<2x16x128xf32>
    %cst_5 = arith.constant 1.700000e+01 : f32
    %17 = vector.broadcast %cst_5 : f32 to vector<1x1x128xf32>
    %18 = arith.subf %17, %14 : vector<1x1x128xf32>
    %19 = vector.broadcast %18 : vector<1x1x128xf32> to vector<2x16x128xf32>
    %20 = arith.cmpf olt, %16, %19 : vector<2x16x128xf32>
    %cst_6 = arith.constant -1.000000e+30 : f32
    %21 = vector.broadcast %cst_6 : f32 to vector<2x16x128xf32>
    %22 = arith.select %20, %10, %21 : vector<2x16x128xi1>, vector<2x16x128xf32>
    %cst_7 = arith.constant dense<0xFF800000> : vector<2x128xf32>
    %23 = vector.multi_reduction <maximumf>, %22, %cst_7 [1] : vector<2x16x128xf32> to vector<2x128xf32>
    %24 = vector.broadcast %12 : vector<1x128xf32> to vector<2x128xf32>
    %25 = arith.addf %23, %24 : vector<2x128xf32>
    %cst_8 = arith.constant 0.000000e+00 : f32
    %26 = vector.broadcast %cst_8 : f32 to vector<2x128xf32>
    %27 = arith.maximumf %25, %26 : vector<2x128xf32>
    %28 = arith.truncf %27 : vector<2x128xf32> to vector<2x128xbf16>
    %c0_9 = arith.constant 0 : index
    %c0_10 = arith.constant 0 : index
    %29 = vector.load %arg4[%c0_9, %c0_10] : memref<128x256xbf16, #tpu.memory_space<vmem>>, vector<128x256xbf16>
    %cst_11 = arith.constant dense<0.000000e+00> : vector<2x256xf32>
    %30 = tpu.matmul %28, %29, %cst_11 {dimension_numbers = #tpu.dot_dimension_numbers<[1], [0], [0], [1], [0, 0, 1, 1], [], []>} : vector<2x128xbf16>, vector<128x256xbf16>, vector<2x256xf32> -> vector<2x256xf32>
    %c0_12 = arith.constant 0 : index
    %c0_13 = arith.constant 0 : index
    %31 = vector.load %arg5[%c0_12, %c0_13] : memref<1x256xf32, #tpu.memory_space<vmem>>, vector<1x256xf32>
    %32 = vector.broadcast %31 : vector<1x256xf32> to vector<2x256xf32>
    %33 = arith.addf %30, %32 : vector<2x256xf32>
    %c0_14 = arith.constant 0 : index
    %c0_15 = arith.constant 0 : index
    %34 = vector.load %arg6[%c0_14, %c0_15] : memref<2x256xf32, #tpu.memory_space<vmem>>, vector<2x256xf32>
    tpu.vector_store %arg6[%c0_14, %c0_15], %33 {strides = array<i32>} : memref<2x256xf32, #tpu.memory_space<vmem>>, vector<2x256xf32>,
    return
  }
  func.func @transform_0(%arg0: i32) -> (i32, i32) {
    %c0_i32 = arith.constant 0 : i32
    %c0_i32_0 = arith.constant 0 : i32
    return %arg0, %c0_i32 : i32, i32
  }
  func.func @transform_1(%arg0: i32) -> (i32, i32) {
    %c0_i32 = arith.constant 0 : i32
    %c0_i32_0 = arith.constant 0 : i32
    %c0_i32_1 = arith.constant 0 : i32
    return %c0_i32, %c0_i32_0 : i32, i32
  }
  func.func @transform_2(%arg0: i32) -> (i32, i32) {
    %c0_i32 = arith.constant 0 : i32
    %c0_i32_0 = arith.constant 0 : i32
    %c0_i32_1 = arith.constant 0 : i32
    return %c0_i32, %c0_i32_0 : i32, i32
  }
  func.func @transform_3(%arg0: i32) -> (i32, i32) {
    %c0_i32 = arith.constant 0 : i32
    %c0_i32_0 = arith.constant 0 : i32
    %c0_i32_1 = arith.constant 0 : i32
    return %c0_i32, %c0_i32_0 : i32, i32
  }
  func.func @transform_4(%arg0: i32) -> (i32, i32) {
    %c0_i32 = arith.constant 0 : i32
    %c0_i32_0 = arith.constant 0 : i32
    %c0_i32_1 = arith.constant 0 : i32
    return %c0_i32, %c0_i32_0 : i32, i32
  }
  func.func @transform_5(%arg0: i32) -> (i32, i32) {
    %c0_i32 = arith.constant 0 : i32
    %c0_i32_0 = arith.constant 0 : i32
    return %arg0, %c0_i32 : i32, i32
  }
}

</mosaic_0001>

<bundles_post_ra>
// kernel: tpu_custom_call.1
= control target key start
LH: loop header
LB: loop body
LE: loop exit
PB: predicated region body
PF: predicated region fallthrough
CT: control target
= control target key end

     0   :  { %10 = vsyncpa [#allocation3], 0  ;;  %s962_s0 = inlined_call_operand.hbm [shape: bf16[32,32], index: 0, kind: input, shape index: {}]   ;;  %s963_s1 = inlined_call_operand.hbm [shape: bf16[160,128], index: 1, kind: input, shape index: {}]   ;;  %s964_s2 = inlined_call_operand.vmem [shape: f32[2,128], index: 2, kind: input, shape index: {}]   ;;  %s965_s3 = inlined_call_operand.hbm [shape: bf16[128,256], index: 3, kind: input, shape index: {}]   ;;  %s966_s4 = inlined_call_operand.vmem [shape: f32[1,256], index: 4, kind: input, shape index: {}]   ;;  %s967_s5 = inlined_call_operand.hbm [shape: f32[2,256], index: 5, kind: output, shape index: {}]  }
   0x1   :  { %11 = vsyncpa [#allocation6], 0 }
   0x2   :  { %12 = vsyncpa [#allocation4], 0  ;;  %s743_s18 = smov [#allocation5]   ;;  %s744_s20 = smov [#allocation2]  }
   0x3   :  { %s30_s19 = sshll.u32 %s743_s18, 4  ;;  %s18_s21 = sshll.u32 %s744_s20, 4  ;;  %s31_s19 = int_to_ptr.vmem [resolvable:$true] %s30_s19  ;;  %s784_s21 = int_to_ptr.vmem [resolvable:$true] %s18_s21 }
   0x4   :  { %s649_s24 = scalar_lea.hbm %s963_s1, 1280 }
   0x5   :  { %p650_p0 = scmp.ne.s32.totalorder %s963_s1, %s649_s24  ;;  %p653_p1 = scmp.lt.u32.totalorder %s649_s24, %s963_s1 }
   0x7   :  { %p655_p2 = pnand %p653_p1, %p650_p0 }
   0x9   :  { %658 = shalt.err (!%p655_p2)
}
   0xa   :  { %s659_s29 = scalar_lea.vmem %s31_s19, 1280  ;;  %p664_p4 = scmp.lt.s32.totalorder %s31_s19, %s31_s19 }
   0xb   :  { %p660_p3 = scmp.ne.s32.totalorder %s31_s19, %s659_s29  ;;  %p665_p5 = scmp.lt.s32.totalorder %s659_s29, %s659_s29 }
   0xd   :  { %p666_p6 = por %p665_p5, %p664_p4 }
   0xf   :  { %p667_p7 = pnand %p666_p6, %p660_p3 }
  0x11   :  { %670 = shalt.err (!%p667_p7)
}
  0x12   :  { %s745_s30 = smov 64   ;;  %s746_s6 = smov 4  }
  0x13   :  { %36 = dma.hbm_to_vmem [thread:$0]  %s963_s1, 1280, %s31_s19, [#allocation6], %s745_s30, %s745_s30, %s746_s6  }
  0x14   :  { %s671_s11 = scalar_lea.hbm %s962_s0, 256 }
  0x15   :  { %p672_p8 = scmp.ne.s32.totalorder %s962_s0, %s671_s11  ;;  %p675_p9 = scmp.lt.u32.totalorder %s671_s11, %s962_s0 }
  0x17   :  { %p677_p10 = pnand %p675_p9, %p672_p8 }
  0x19   :  { %680 = shalt.err (!%p677_p10)
}
  0x1a   :  { %s681_s16 = scalar_lea.vmem %s784_s21, 256  ;;  %p686_p12 = scmp.lt.s32.totalorder %s784_s21, %s784_s21 }
  0x1b   :  { %p682_p11 = scmp.ne.s32.totalorder %s784_s21, %s681_s16  ;;  %p687_p13 = scmp.lt.s32.totalorder %s681_s16, %s681_s16 }
  0x1d   :  { %p688_p0 = por %p687_p13, %p686_p12 }
  0x1f   :  { %p689_p1 = pnand %p688_p0, %p682_p11 }
  0x21   :  { %692 = shalt.err (!%p689_p1)
}
  0x22   :  { %24 = dma.hbm_to_vmem [thread:$0]  %s962_s0, 256, %s784_s21, [#allocation3], %s745_s30, %s745_s30, %s746_s6  }
  0x23   :  { %s747_s18 = smov [#allocation7]   ;;  %s693_s23 = scalar_lea.hbm %s965_s3, 2048 }
  0x24   :  { %s44_s19 = sshll.u32 %s747_s18, 4  ;;  %p694_p2 = scmp.ne.s32.totalorder %s965_s3, %s693_s23  ;;  %s45_s19 = int_to_ptr.vmem [resolvable:$true] %s44_s19 }
  0x25   :  { %p697_p3 = scmp.lt.u32.totalorder %s693_s23, %s965_s3 }
  0x27   :  { %p699_p4 = pnand %p697_p3, %p694_p2 }
  0x29   :  { %702 = shalt.err (!%p699_p4)
}
  0x2a   :  { %s703_s28 = scalar_lea.vmem %s45_s19, 2048  ;;  %p708_p6 = scmp.lt.s32.totalorder %s45_s19, %s45_s19 }
  0x2b   :  { %p704_p5 = scmp.ne.s32.totalorder %s45_s19, %s703_s28  ;;  %p709_p7 = scmp.lt.s32.totalorder %s703_s28, %s703_s28 }
  0x2d   :  { %p710_p8 = por %p709_p7, %p708_p6 }
  0x2f   :  { %p711_p9 = pnand %p710_p8, %p704_p5 }
  0x31   :  { %714 = shalt.err (!%p711_p9)
}
  0x32   :  { %s748_s0 = smov 128   ;;  %s749_s21 = smov 8  }
  0x33   :  { %50 = dma.hbm_to_vmem [thread:$0]  %s965_s3, 2048, %s45_s19, [#allocation6], %s748_s0, %s748_s0, %s749_s21  }
  0x34   :  { %737 = dma.done.wait [#allocation3], 256  }
  0x35   :  { %738 = vsyncadd [#allocation3], 4294967040 }
  0x36   :  { %739 = dma.done.wait [#allocation6], 3328  }
  0x37   :  { %740 = vsyncadd [#allocation6], 4294963968  ;;  %v75_v0 = vlaneseq  ;;  %v750_v1 = vmov 0   ;;  %v566_v3 = vld [vmem:[#allocation2] sm:$0xff]   ;;  %v573_v4 = vld [vmem:[#allocation2 + $0x8] sm:$0xff]   ;;  %s751_s3 = smov 32  }
  0x38   :  { %262 = vmatprep.subr.bf16.mxu0 %v750_v1  ;;  %499 = vmatprep.mubr.bf16.mxu1 %v750_v1  ;;  %v837_v5 = vunpack.c.l.bf16 %v566_v3  ;;  %v839_v6 = vunpack.c.h.bf16 %v566_v3  ;;  %v841_v7 = vunpack.c.l.bf16 %v573_v4  ;;  %v843_v8 = vunpack.c.h.bf16 %v573_v4  ;;  %v615_v9 = vld [vmem:[#allocation5] sm:$0xff]   ;;  %v616_v10 = vld [vmem:[#allocation5 + $0x8] sm:$0xff]   ;;  %v617_v31 = vld [vmem:[#allocation5 + $0x10] sm:$0xff]   ;;  %s752_s7 = smov 96   ;;  %s753_s10 = smov [#allocation8]  }
  0x39   :  { %v833_v2 = vshrl.u32 %v75_v0, 7  ;;  %263 = vmatpush1.bf16.msra.mxu0 %v615_v9  ;;  %v618_v41 = vld [vmem:[#allocation5 + $0x18] sm:$0xff]   ;;  %v619_v47 = vld [vmem:[#allocation5 + $0x20] sm:$0xff]   ;;  %vm157_vm4 = vcmask 261120   ;;  %v620_v54 = vld [vmem:[#allocation5 + $0x28] sm:$0xff]   ;;  %vm162_vm5 = vcmask 523264  }
  0x3a   :  { %v71_v11 = vrot.slane %v837_v5, 1  ;;  %v72_v12 = vrot.slane %v839_v6, 1  ;;  %v73_v13 = vrot.slane %v841_v7, 1  ;;  %v91_v14 = vrot.slane %v837_v5, 3  ;;  %264 = vmatprep.subr.bf16.mxu0 %v750_v1  ;;  %v621_v55 = vld [vmem:[#allocation5 + $0x30] sm:$0xff]   ;;  %v622_v56 = vld [vmem:[#allocation5 + $0x38] sm:$0xff]  }
  0x3b   :  { %vm77_vm0 = vcmp.lt.s32.totalorder %v833_v2, 7  ;;  %vm95_vm1 = vcmp.lt.s32.totalorder %v833_v2, 5  ;;  %vm86_vm2 = vcmp.lt.s32.totalorder %v833_v2, 6  ;;  %v92_v15 = vrot.slane %v839_v6, 3  ;;  %v623_v57 = vld [vmem:[#allocation5 + $0x40] sm:$0xff]   ;;  %v624_v58 = vld [vmem:[#allocation5 + $0x48] sm:$0xff]  }
  0x3c   :  { %v93_v16 = vrot.slane %v841_v7, 3  ;;  %v82_v17 = vrot.slane %v837_v5, 2  ;;  %v83_v18 = vrot.slane %v839_v6, 2  ;;  %v79_v19 = vsel %vm77_vm0, %v72_v12, %v73_v13  ;;  %s526_s11 = sshll.u32 %s753_s10, 4  ;;  %s527_s11 = int_to_ptr.vmem [resolvable:$true] %s526_s11 }
  0x3d   :  { %v80_v20 = vsel %vm77_vm0, %v71_v11, %v72_v12  ;;  %v84_v21 = vrot.slane %v841_v7, 2  ;;  %v74_v22 = vrot.slane %v843_v8, 1  ;;  %v98_v25 = vsel %vm95_vm1, %v91_v14, %v92_v15  ;;  %265 = vmatpush1.bf16.msra.mxu0 %v616_v10  ;;  %s715_s12 = scalar_lea.vmem %s527_s11, 64  ;;  %p720_p11 = scmp.lt.s32.totalorder %s527_s11, %s527_s11 }
  0x3e   :  { %v585_v23 = vpack.i.bf16 %v79_v19, %v80_v20  ;;  %v97_v24 = vsel %vm95_vm1, %v92_v15, %v93_v16  ;;  %v89_v26 = vsel %vm86_vm2, %v82_v17, %v83_v18  ;;  %v85_v33 = vrot.slane %v843_v8, 2  ;;  %266 = vmatprep.subr.bf16.mxu0 %v750_v1  ;;  %p716_p10 = scmp.ne.s32.totalorder %s527_s11, %s715_s12  ;;  %p721_p12 = scmp.lt.s32.totalorder %s715_s12, %s715_s12 }
  0x3f   :  { %v595_v27 = vpack.i.bf16 %v97_v24, %v98_v25  ;;  %v88_v28 = vsel %vm86_vm2, %v83_v18, %v84_v21  ;;  %v78_v29 = vsel %vm77_vm0, %v73_v13, %v74_v22  ;;  %v81_v30 = vsel %vm77_vm0, %v74_v22, %v71_v11 }
  0x40   :  { %586 = vrot.lane.b32.xlu0 %v585_v23, %s751_s3  ;;  %v590_v32 = vpack.i.bf16 %v88_v28, %v89_v26  ;;  %v94_v34 = vrot.slane %v843_v8, 3  ;;  %v600_v35 = vpack.i.bf16 %v81_v30, %v78_v29  ;;  %v100_v36 = vrot.slane %v837_v5, 4  ;;  %v625_v28 = vld [vmem:[#allocation7 + $0x4] ss:$8 sps:$4 sm:$0xff]   ;;  %v627_v29 = vld [vmem:[#allocation7] ss:$8 sps:$4 sm:$0xff]   ;;  %p722_p13 = por %p721_p12, %p720_p11 }
  0x41   :  { %596 = vrot.lane.b32.xlu1 %v595_v27, %s752_s7  ;;  %vm104_vm3 = vcmp.lt.s32.totalorder %v833_v2, 4  ;;  %v87_v37 = vsel %vm86_vm2, %v84_v21, %v85_v33  ;;  %v90_v38 = vsel %vm86_vm2, %v85_v33, %v82_v17  ;;  %267 = vmatpush1.bf16.msra.mxu0 %v617_v31  ;;  %v101_v42 = vrot.slane %v839_v6, 4  ;;  %v628_v30 = vld [vmem:[#allocation7 + $0x14] ss:$8 sps:$4 sm:$0xff]   ;;  %v630_v31 = vld [vmem:[#allocation7 + $0x10] ss:$8 sps:$4 sm:$0xff]  }
  0x42   :  { %v96_v39 = vsel %vm95_vm1, %v93_v16, %v94_v34  ;;  %v99_v40 = vsel %vm95_vm1, %v94_v34, %v91_v14  ;;  %v605_v43 = vpack.i.bf16 %v90_v38, %v87_v37  ;;  %268 = vmatprep.subr.bf16.mxu0 %v750_v1  ;;  %v102_v44 = vrot.slane %v841_v7, 4  ;;  %467 = vmatprep.subr.bf16.mxu1 %v625_v28  ;;  %v633_v33 = vld [vmem:[#allocation7 + $0x20] ss:$8 sps:$4 sm:$0xff]   ;;  %v634_v34 = vld [vmem:[#allocation7 + $0x34] ss:$8 sps:$4 sm:$0xff]   ;;  %p723_p0 = pnand %p722_p13, %p716_p10 }
  0x43   :  { %v103_v45 = vrot.slane %v843_v8, 4  ;;  %v610_v46 = vpack.i.bf16 %v99_v40, %v96_v39  ;;  %v107_v48 = vsel %vm104_vm3, %v100_v36, %v101_v42  ;;  %vm167_vm6 = vcmask 785408   ;;  %468 = vmatpush1.bf16.msra.mxu1 %v627_v29  ;;  %v639_v37 = vld [vmem:[#allocation7 + $0x40] ss:$8 sps:$4 sm:$0xff]   ;;  %v640_v38 = vld [vmem:[#allocation7 + $0x54] ss:$8 sps:$4 sm:$0xff]  }
  0x44   :  { %591 = vrot.lane.b32.xlu0 %v590_v32, %s745_s30  ;;  %v106_v49 = vsel %vm104_vm3, %v101_v42, %v102_v44  ;;  %469 = vmatprep.subr.bf16.mxu1 %v628_v30  ;;  %v631_v32 = vld [vmem:[#allocation7 + $0x24] ss:$8 sps:$4 sm:$0xff]   ;;  %v642_v39 = vld [vmem:[#allocation7 + $0x50] ss:$8 sps:$4 sm:$0xff]   ;;  %v646_v42 = vld [vmem:[#allocation7 + $0x74] ss:$8 sps:$4 sm:$0xff]  }
  0x45   :  { %601 = vrot.lane.b32.xlu1 %v600_v35, %s751_s3  ;;  %v105_v50 = vsel %vm104_vm3, %v102_v44, %v103_v45  ;;  %v108_v51 = vsel %vm104_vm3, %v103_v45, %v100_v36  ;;  %269 = vmatpush1.bf16.msra.mxu0 %v618_v41  ;;  %v173_v52 = vpack.c.bf16 %v106_v49, %v107_v48  ;;  %v636_v35 = vld [vmem:[#allocation7 + $0x30] ss:$8 sps:$4 sm:$0xff]   ;;  %v637_v36 = vld [vmem:[#allocation7 + $0x44] ss:$8 sps:$4 sm:$0xff]   ;;  %v645_v41 = vld [vmem:[#allocation7 + $0x60] ss:$8 sps:$4 sm:$0xff]   ;;  %v313_v48 = vcvt.s32.f32 %v833_v2 }
  0x46   :  { %v175_v53 = vpack.c.bf16 %v108_v51, %v105_v50  ;;  %270 = vmatprep.subr.bf16.mxu0 %v750_v1  ;;  %v643_v40 = vld [vmem:[#allocation7 + $0x64] ss:$8 sps:$4 sm:$0xff]   ;;  %v311_v44 = vld [vmem:[%s964_s2] sm:$0x3]  ;;  %vm383_vm9 = vcmask 1041409  }
  0x47   :  { %546 = vmatprep.mubr.msk.bf16.mxu0 %vm157_vm4, %v173_v52  ;;  %470 = vmatpush1.bf16.msra.mxu1 %v630_v31  ;;  %v315_v45 = vsub.f32 17.0, %v311_v44  ;;  %v366_v28 = vld [vmem:[%s966_s4] sm:$0x3] }
  0x48   :  { %606 = vrot.lane.b32.xlu0 %v605_v43, %s745_s30  ;;  %471 = vmatprep.subr.bf16.mxu1 %v631_v32  ;;  %v648_v43 = vld [vmem:[#allocation7 + $0x70] ss:$8 sps:$4 sm:$0xff]  }
  0x49   :  { %611 = vrot.lane.b32.xlu1 %v610_v46, %s752_s7  ;;  %271 = vmatpush1.bf16.msra.mxu0 %v619_v47  ;;  %v318_v46 = vsub.s32 1, %v833_v2  ;;  %v312_v47 = vadd.s32 8, %v833_v2 }
  0x4a   :  { %272 = vmatprep.subr.bf16.mxu0 %v750_v1 }
  0x4b   :  { %472 = vmatpush1.bf16.msra.mxu1 %v633_v33  ;;  %v319_v49 = vrot.slane %v315_v45, %v318_v46  ;;  %v314_v50 = vcvt.s32.f32 %v312_v47  ;;  %v375_v30 = vrot.slane %v366_v28, %v318_v46 }
  0x4c   :  { %473 = vmatprep.subr.bf16.mxu1 %v634_v34 }
  0x4d   :  { %273 = vmatpush1.bf16.msra.mxu0 %v620_v54  ;;  %vm930_vm7 = vcmp.lt.f32.partialorder %v313_v48, %v319_v49  ;;  %vm934_vm8 = vcmp.lt.f32.partialorder %v314_v50, %v319_v49 }
  0x4e   :  { %274 = vmatprep.subr.bf16.mxu0 %v750_v1 }
  0x4f   :  { %474 = vmatpush1.bf16.msra.mxu1 %v636_v35 }
  0x50   :  { %475 = vmatprep.subr.bf16.mxu1 %v637_v36 }
  0x51   :  { %275 = vmatpush1.bf16.msra.mxu0 %v621_v55 }
  0x52   :  { %276 = vmatprep.subr.bf16.mxu0 %v750_v1 }
  0x53   :  { %476 = vmatpush1.bf16.msra.mxu1 %v639_v37 }
  0x54   :  { %477 = vmatprep.subr.bf16.mxu1 %v640_v38 }
  0x55   :  { %277 = vmatpush1.bf16.msra.mxu0 %v622_v56 }
  0x56   :  { %278 = vmatprep.subr.bf16.mxu0 %v750_v1 }
  0x57   :  { %478 = vmatpush1.bf16.msra.mxu1 %v642_v39 }
  0x58   :  { %479 = vmatprep.subr.bf16.mxu1 %v643_v40 }
  0x59   :  { %279 = vmatpush1.bf16.msra.mxu0 %v623_v57 }
  0x5a   :  { %280 = vmatprep.subr.bf16.mxu0 %v750_v1 }
  0x5b   :  { %480 = vmatpush1.bf16.msra.mxu1 %v645_v41 }
  0x5c   :  { %481 = vmatprep.subr.bf16.mxu1 %v646_v42 }
  0x5d   :  { %281 = vmatpush1.bf16.msra.mxu0 %v624_v58 }
  0x5f   :  { %482 = vmatpush1.bf16.msra.mxu1 %v648_v43 }
  0xb2   :  { %v587_v59 = vpop.permute.xlu0 %586 }
  0xb3   :  { %v597_v60 = vpop.permute.xlu1 %596  ;;  %v589_v61 = vunpack.i.h.bf16 %v587_v59  ;;  %v588_v62 = vunpack.i.l.bf16 %v587_v59 }
  0xb4   :  { %v599_v63 = vunpack.i.h.bf16 %v597_v60  ;;  %v598_v0 = vunpack.i.l.bf16 %v597_v60 }
  0xb5   :  { %v159_v11 = vsel %vm157_vm4, %v839_v6, %v589_v61  ;;  %v158_v12 = vsel %vm157_vm4, %v837_v5, %v588_v62 }
  0xb6   :  { %v592_v3 = vpop.permute.xlu0 %591 }
  0xb7   :  { %v594_v4 = vunpack.i.h.bf16 %v592_v3  ;;  %v593_v9 = vunpack.i.l.bf16 %v592_v3  ;;  %v602_v10 = vpop.permute.xlu1 %601 }
  0xb8   :  { %v604_v1 = vunpack.i.h.bf16 %v602_v10  ;;  %v603_v13 = vunpack.i.l.bf16 %v602_v10 }
  0xb9   :  { %v163_v14 = vsel %vm162_vm5, %v158_v12, %v593_v9  ;;  %v164_v15 = vsel %vm162_vm5, %v159_v11, %v594_v4 }
  0xba   :  { %v161_v16 = vsel %vm157_vm4, %v843_v8, %v604_v1  ;;  %v160_v17 = vsel %vm157_vm4, %v841_v7, %v603_v13  ;;  %v607_v18 = vpop.permute.xlu0 %606  ;;  %v168_v19 = vsel %vm167_vm6, %v163_v14, %v598_v0  ;;  %v169_v6 = vsel %vm167_vm6, %v164_v15, %v599_v63 }
  0xbb   :  { %v609_v20 = vunpack.i.h.bf16 %v607_v18  ;;  %v608_v21 = vunpack.i.l.bf16 %v607_v18  ;;  %v612_v5 = vpop.permute.xlu1 %611  ;;  %v172_v22 = vpack.c.bf16 %v169_v6, %v168_v19  ;;  %v342_v1 = vsub.s32 0, %v833_v2 }
  0xbc   :  { %v614_v23 = vunpack.i.h.bf16 %v612_v5  ;;  %v613_v24 = vunpack.i.l.bf16 %v612_v5 }
  0xbd   :  { %v166_v25 = vsel %vm162_vm5, %v161_v16, %v609_v20  ;;  %v165_v26 = vsel %vm162_vm5, %v160_v17, %v608_v21  ;;  %295 = vmatmul.mubr.bf16.vlgmr.msra.gmra.mrb[0].mxu0 %v172_v22  ;;  %v343_v16 = vrot.slane %v311_v44, %v342_v1  ;;  %v371_v29 = vrot.slane %v366_v28, %v342_v1 }
  0xbe   :  { %547 = vmatprep.mubr.msk.bf16.mxu0 %vm157_vm4, %v175_v53  ;;  %v170_v7 = vsel %vm167_vm6, %v165_v26, %v613_v24  ;;  %v171_v8 = vsel %vm167_vm6, %v166_v25, %v614_v23 }
  0xbf   :  { %v174_v27 = vpack.c.bf16 %v171_v8, %v170_v7 }
  0xc5   :  { %303 = vmatmul.mubr.bf16.gmra.mrb[4].mxu0 %v174_v27 }
 0x190   :  { %v296_v51 = vpop.f32.mrb[0].mxu0 }
 0x191   :  { %v298_v54 = vpop.f32.mrb[1].mxu0  ;;  %v322_v56 = vsel %vm930_vm7, %v296_v51, -1e+30 }
 0x192   :  { %v299_v55 = vpop.f32.mrb[2].mxu0 }
 0x193   :  { %v323_v57 = vsel %vm934_vm8, %v299_v55, -1e+30  ;;  %v301_v58 = vpop.f32.mrb[3].mxu0 }
 0x194   :  { %v326_v59 = vmax.f32 %v322_v56, %v323_v57 }
 0x196   :  { %v327_v60 = vrot.slane %v326_v59, 4 }
 0x198   :  { %v328_v61 = vmax.f32 %v326_v59, %v327_v60  ;;  %v304_v62 = vpop.f32.mrb[4].mxu0 }
 0x199   :  { %v306_v63 = vpop.f32.mrb[5].mxu0  ;;  %v324_v4 = vsel %vm930_vm7, %v304_v62, -1e+30 }
 0x19a   :  { %v329_v0 = vrot.slane %v328_v61, 2  ;;  %v307_v3 = vpop.f32.mrb[6].mxu0 }
 0x19b   :  { %v325_v9 = vsel %vm934_vm8, %v307_v3, -1e+30  ;;  %v309_v10 = vpop.f32.mrb[7].mxu0 }
 0x19c   :  { %v330_v11 = vmax.f32 %v328_v61, %v329_v0  ;;  %v333_v12 = vmax.f32 %v324_v4, %v325_v9 }
 0x19e   :  { %v331_v13 = vrot.slane %v330_v11, 1  ;;  %v334_v14 = vrot.slane %v333_v12, 4 }
 0x1a0   :  { %v335_v15 = vmax.f32 %v333_v12, %v334_v14  ;;  %v332_v17 = vmax.f32 %v330_v11, %v331_v13 }
 0x1a2   :  { %v336_v18 = vrot.slane %v335_v15, 2  ;;  %v344_v6 = vadd.f32 %v343_v16, %v332_v17 }
 0x1a4   :  { %v337_v19 = vmax.f32 %v335_v15, %v336_v18  ;;  %v346_v22 = vmax.f32 %v344_v6, 0.0 }
 0x1a6   :  { %v338_v20 = vrot.slane %v337_v19, 1  ;;  %v348_v24 = vpack.c.bf16 %v346_v22, %v346_v22 }
 0x1a8   :  { %v339_v21 = vmax.f32 %v337_v19, %v338_v20  ;;  %v380_v7 = vunpack.c.l.b16 %v348_v24 }
 0x1aa   :  { %v345_v5 = vadd.f32 %v343_v16, %v339_v21 }
 0x1ac   :  { %v347_v23 = vmax.f32 %v345_v5, 0.0 }
 0x1ae   :  { %v349_v25 = vpack.c.bf16 %v347_v23, %v347_v23 }
 0x1b0   :  { %v381_v26 = vunpack.c.l.b16 %v349_v25 }
 0x1b2   :  { %v382_v8 = vrot.slane %v381_v26, 7 }
 0x1b4   :  { %v384_v2 = vsel %vm383_vm9, %v382_v8, %v380_v7 }
 0x1b5   :  { %v385_v27 = vpack.c.b16 %v384_v2, %v384_v2 }
 0x1b7   :  { %500 = vmatmul.mubr.bf16.vlgmr.msra.gmra.mrb[0].mxu1 %v385_v27 }
 0x28a   :  { %v501_v31 = vpop.f32.mrb[0].mxu1 }
 0x28b   :  { %v502_v32 = vadd.f32 %v501_v31, %v371_v29  ;;  %v503_v33 = vpop.f32.mrb[1].mxu1 }
 0x28c   :  { %v504_v34 = vadd.f32 %v503_v33, %v375_v30  ;;  %v505_v35 = vpop.f32.mrb[2].mxu1 }
 0x28d   :  { %v506_v36 = vpop.f32.mrb[3].mxu1 }
 0x28e   :  { %v510_v37 = vcombine.low %v502_v32, %v504_v34 }
 0x290   :  { %564 = vst.sshfl [vmem:[#allocation8] sm:$0x33 pattern:$0x76325410] %v510_v37 }
 0x291   :  { %726 = shalt.err (!%p723_p0)
}
 0x292   :  { %s727_s14 = scalar_lea.hbm %s967_s5, 64 }
 0x293   :  { %p728_p1 = scmp.ne.s32.totalorder %s967_s5, %s727_s14  ;;  %p731_p2 = scmp.lt.u32.totalorder %s727_s14, %s967_s5 }
 0x295   :  { %p733_p3 = pnand %p731_p2, %p728_p1 }
 0x297   :  { %736 = shalt.err (!%p733_p3)
}
 0x298   :  { %529 = dma.vmem_to_hbm [thread:$0]  %s527_s11, 64, %s967_s5, [#allocation4]  }
 0x299   :  { %741 = dma.done.wait [#allocation4], 64  }
 0x29a   :  { %742 = vsyncadd [#allocation4], 4294967232 }
 0x29b   :  { %533 = vsyncpa [#allocation3], 1 }
 0x29c   :  { %534 = vsyncpa [#allocation6], 1 }
 0x29d   :  { %535 = vsyncpa [#allocation4], 1 }

</bundles_post_ra>
